<compile_context>
chip_gen: v6e
topology: v6e:2x2x1
jax: 0.10.0
libtpu: 0.0.40
codegen_flags: <defaults>
</compile_context>

<pallas_src>
import functools

import jax
import jax.numpy as jnp
from jax.experimental import pallas as pl
from jax.experimental.pallas import tpu as pltpu

EPS = 1e-15


def _log_sigmoid(x):
    # Numerically stable, single-expression log(sigmoid(x)):
    #   logsigmoid(x) = min(x, 0) - log1p(exp(-|x|))
    return jnp.minimum(x, 0.0) - jnp.log1p(jnp.exp(-jnp.abs(x)))


def _round_up(x, m):
    return ((x + m - 1) // m) * m


def _cbow_triple_kernel(th_idx, tr_idx, tt_idx, ch_idx, cr_idx, ct_idx,
                        tbl_ref, out_ref, lhs_ref, *, b_valid, num_ctx):
    """Fused CBOWTriple forward (single MXU matmul for all lookups).

    th/tr/tt_idx : (2*Bp, 1) int32   target indices per column, rows=[pos;neg]
    ch/cr/ct_idx : (C*Bp, 1) int32   context indices per column, slot-major
    tbl_ref      : (3*Np, 6*D) f32   block-diagonal packed tables
                   (block c rows [c*Np,(c+1)*Np) -> cols [c*2D, (c+1)*2D),
                    left D = target table, right D = context table)
    out_ref      : (1, 1) f32 in SMEM (scalar loss)
    lhs_ref      : (3*Bp, 3*Np) f32 VMEM scratch (stacked one-hot LHS)
    """
    two_bp = th_idx.shape[0]
    bp = two_bp // 2
    np_rows = tbl_ref.shape[0] // 3
    d = tbl_ref.shape[1] // 6
    C = num_ctx

    # --- hoisted iotas: built once, reused by all three columns -------------
    lanes_t = jax.lax.broadcasted_iota(jnp.int32, (two_bp, np_rows), 1)
    lanes_c = jax.lax.broadcasted_iota(jnp.int32, (bp, np_rows), 1)

    tgt_refs = (th_idx, tr_idx, tt_idx)      # column order: head, rel, tail
    ctx_refs = (ch_idx, cr_idx, ct_idx)
    for col in range(3):
        lo = col * np_rows
        # target one-hot: pos rows stacked over neg rows (VPU compare)
        lhs_ref[0:two_bp, lo:lo + np_rows] = (
            lanes_t == tgt_refs[col][...]).astype(jnp.float32)
        # context multi-hot: accumulate per slot directly on the (Bp, Np)
        # iota — no (C*Bp, Np) one-hot intermediate is materialized.
        cref = ctx_refs[col]
        mh = (lanes_c == cref[0:bp, :]).astype(jnp.float32)
        for c in range(1, C):
            mh = mh + (lanes_c == cref[c * bp:(c + 1) * bp, :]).astype(
                jnp.float32)
        lhs_ref[two_bp:two_bp + bp, lo:lo + np_rows] = mh

    # --- single MXU pass: (3Bp, 3Np) @ (3Np, 6D) -> (3Bp, 6D) ---------------
    emb = jnp.dot(lhs_ref[...], tbl_ref[...],
                  preferred_element_type=jnp.float32)

    # Row-validity mask for batch padding (b_valid is a trace-time constant).
    row_ids = jax.lax.broadcasted_iota(jnp.int32, (bp, 1), 0)
    mask = (row_ids < b_valid).astype(jnp.float32)
    inv_b = 1.0 / b_valid
    inv_c = 1.0 / C

    total = 0.0
    for col in range(3):
        base = col * 2 * d
        pos_emb = emb[0:bp, base:base + d]                      # (Bp, D)
        neg_emb = emb[bp:two_bp, base:base + d]                 # (Bp, D)
        ctx_mean = emb[two_bp:two_bp + bp,
                       base + d:base + 2 * d] * inv_c           # (Bp, D)
        pos_sum = jnp.sum(pos_emb * ctx_mean, axis=1, keepdims=True) + EPS
        neg_sum = jnp.sum(neg_emb * ctx_mean, axis=1, keepdims=True) + EPS
        pos_score = -_log_sigmoid(pos_sum)
        neg_score = -_log_sigmoid(1.0 - neg_sum)
        # masked mean over the valid batch rows only
        total = total + jnp.sum((pos_score + neg_score) * mask) * inv_b

    # torch.mean of a 0-d sum == sum of the three scalar component losses.
    out_ref[0, 0] = total


def pack_tables(params):
    """Pad tables to Np (multiple of 128) rows and pack them ONCE into the
    block-diagonal (3*Np, 6*D) RHS used by the kernel.

    Hoisted out of the per-step loss (perf review item: no per-step jnp.pad
    HBM copies of the tables).  Column order: 0=head, 1=rel, 2=tail.
    """
    N, D = params["target_head"].shape
    Np = _round_up(N, 128)
    pairs = (("target_head", "context_head"),
             ("target_rel", "context_rel"),
             ("target_tail", "context_tail"))
    big = jnp.zeros((3 * Np, 6 * D), jnp.float32)
    for c, (tn, cn) in enumerate(pairs):
        big = big.at[c * Np:c * Np + N,
                     c * 2 * D:c * 2 * D + D].set(params[tn].astype(jnp.float32))
        big = big.at[c * Np:c * Np + N,
                     c * 2 * D + D:(c + 1) * 2 * D].set(params[cn].astype(jnp.float32))
    return big


@jax.jit
def cbow_triple_loss(pos_triples, neg_triples, context_triples, packed_tbl):
    B = pos_triples.shape[0]
    C = context_triples.shape[1]
    n3, d6 = packed_tbl.shape
    Np = n3 // 3
    D = d6 // 6
    Bp = _round_up(B, 8)      # sublane-aligned batch

    pos = pos_triples.astype(jnp.int32)
    neg = neg_triples.astype(jnp.int32)
    ctx = context_triples.astype(jnp.int32)
    if Bp != B:
        pos = jnp.pad(pos, ((0, Bp - B), (0, 0)))
        neg = jnp.pad(neg, ((0, Bp - B), (0, 0)))
        ctx = jnp.pad(ctx, ((0, Bp - B), (0, 0), (0, 0)))

    # Stack pos/neg, group context indices slot-major, and pre-split per
    # column so the kernel never does single-lane extracts from a 3-wide block.
    tgt = jnp.concatenate([pos, neg], axis=0)                    # (2*Bp, 3)
    ctxm = jnp.transpose(ctx, (1, 0, 2)).reshape(C * Bp, 3)      # (C*Bp, 3)
    tgt_cols = [tgt[:, c:c + 1] for c in range(3)]               # 3 x (2Bp, 1)
    ctx_cols = [ctxm[:, c:c + 1] for c in range(3)]              # 3 x (C*Bp, 1)

    # Scoped-VMEM limit sized from the actual footprint, with headroom; the
    # 32 MiB floor >= all per-gen defaults, 64 MiB cap keeps v7x safe.
    lhs_elems = 3 * Bp * 3 * Np
    footprint = 4 * (packed_tbl.size + 2 * lhs_elems + 3 * Bp * 6 * D)
    vmem_limit = int(min(64 << 20, max(32 << 20, 4 * footprint)))

    vmem = pl.BlockSpec(memory_space=pltpu.MemorySpace.VMEM)
    kernel = functools.partial(_cbow_triple_kernel, b_valid=B, num_ctx=C)
    out = pl.pallas_call(
        kernel,
        out_shape=jax.ShapeDtypeStruct((1, 1), jnp.float32),
        in_specs=[vmem] * 7,
        out_specs=pl.BlockSpec(memory_space=pltpu.MemorySpace.SMEM),
        scratch_shapes=[pltpu.VMEM((3 * Bp, 3 * Np), jnp.float32)],
        compiler_params=pltpu.CompilerParams(vmem_limit_bytes=vmem_limit),
    )(tgt_cols[0], tgt_cols[1], tgt_cols[2],
      ctx_cols[0], ctx_cols[1], ctx_cols[2], packed_tbl)
    return out[0, 0]


def _reference_loss(pos_triples, neg_triples, context_triples, params):
    def get_loss(pos_n, neg_n, ctx_n, target_tbl, context_tbl):
        pos_emb = jnp.take(target_tbl, pos_n, axis=0)
        neg_emb = jnp.take(target_tbl, neg_n, axis=0)
        ctx_emb = jnp.take(context_tbl, ctx_n, axis=0).mean(axis=1)
        pos_sum = jnp.sum(pos_emb * ctx_emb, axis=1) + EPS
        neg_sum = jnp.sum(neg_emb * ctx_emb, axis=1) + EPS
        pos_score = -_log_sigmoid(pos_sum)
        neg_score = -_log_sigmoid(1.0 - neg_sum)
        return jnp.mean(pos_score + neg_score)

    lh = get_loss(pos_triples[:, 0], neg_triples[:, 0], context_triples[:, :, 0],
                  params["target_head"], params["context_head"])
    lt = get_loss(pos_triples[:, 2], neg_triples[:, 2], context_triples[:, :, 2],
                  params["target_tail"], params["context_tail"])
    lr = get_loss(pos_triples[:, 1], neg_triples[:, 1], context_triples[:, :, 1],
                  params["target_rel"], params["context_rel"])
    return lh + lt + lr


def init_params(key, num_nodes, embedding_dim, padding_index):
    n = num_nodes + 1
    names = ["target_head", "target_tail", "target_rel",
             "context_head", "context_tail", "context_rel"]
    keys = jax.random.split(key, len(names))
    params = {}
    for name, k in zip(names, keys):
        w = jax.random.uniform(k, (n, embedding_dim), dtype=jnp.float32,
                               minval=-1.0, maxval=1.0)
        w = w.at[padding_index].set(0.0)
        params[name] = w
    return params


if __name__ == "__main__":
    num_nodes = 63          # table size N = num_nodes + 1 = 64 (padded to 128)
    embedding_dim = 32
    padding_index = num_nodes
    B, C = 8, 4

    key = jax.random.PRNGKey(0)
    k_par, k_pos, k_neg, k_ctx = jax.random.split(key, 4)

    params = init_params(k_par, num_nodes, embedding_dim, padding_index)
    N = num_nodes + 1
    pos_triples = jax.random.randint(k_pos, (B, 3), 0, N, dtype=jnp.int32)
    neg_triples = jax.random.randint(k_neg, (B, 3), 0, N, dtype=jnp.int32)
    context_triples = jax.random.randint(k_ctx, (B, C, 3), 0, N, dtype=jnp.int32)

    packed_tbl = pack_tables(params)   # hoisted: pack/pad ONCE, reuse per step
    loss = cbow_triple_loss(pos_triples, neg_triples, context_triples, packed_tbl)
    jax.block_until_ready(loss)

    ref = _reference_loss(pos_triples, neg_triples, context_triples, params)
    assert jnp.allclose(loss, ref, atol=1e-5, rtol=1e-5), (loss, ref)

    print("KERNEL_OK")
</pallas_src>

<mosaic_0001>
module attributes {stable_mosaic.version = 11 : i64} {
  func.func @_cbow_triple_kernel(%arg0: memref<16x1xi32, #tpu.memory_space<vmem>>, %arg1: memref<16x1xi32, #tpu.memory_space<vmem>>, %arg2: memref<16x1xi32, #tpu.memory_space<vmem>>, %arg3: memref<32x1xi32, #tpu.memory_space<vmem>>, %arg4: memref<32x1xi32, #tpu.memory_space<vmem>>, %arg5: memref<32x1xi32, #tpu.memory_space<vmem>>, %arg6: memref<384x192xf32, #tpu.memory_space<vmem>>, %arg7: memref<1x1xf32, #tpu.memory_space<smem>>, %arg8: memref<24x384xf32, #tpu.memory_space<vmem>>) attributes {dimension_semantics = [], scalar_prefetch = 0 : i64, scratch_operands = 1 : i64, tpu.core_type = #tpu.core_type<tc>} {
    %0 = tpu.iota {dimensions = array<i32: 1>} : vector<16x128xi32>
    %1 = tpu.iota {dimensions = array<i32: 1>} : vector<8x128xi32>
    %c0 = arith.constant 0 : index
    %c0_0 = arith.constant 0 : index
    %2 = vector.load %arg0[%c0, %c0_0] : memref<16x1xi32, #tpu.memory_space<vmem>>, vector<16x1xi32>
    %3 = vector.broadcast %2 : vector<16x1xi32> to vector<16x128xi32>
    %4 = arith.cmpi eq, %0, %3 : vector<16x128xi32>
    %5 = arith.extui %4 : vector<16x128xi1> to vector<16x128xi32>
    %6 = arith.sitofp %5 : vector<16x128xi32> to vector<16x128xf32>
    %c0_1 = arith.constant 0 : index
    %c0_2 = arith.constant 0 : index
    %7 = vector.load %arg8[%c0_1, %c0_2] : memref<24x384xf32, #tpu.memory_space<vmem>>, vector<16x128xf32>
    tpu.vector_store %arg8[%c0_1, %c0_2], %6 {strides = array<i32>} : memref<24x384xf32, #tpu.memory_space<vmem>>, vector<16x128xf32>,
    %c0_3 = arith.constant 0 : index
    %c0_4 = arith.constant 0 : index
    %8 = vector.load %arg3[%c0_3, %c0_4] : memref<32x1xi32, #tpu.memory_space<vmem>>, vector<8x1xi32>
    %9 = vector.broadcast %8 : vector<8x1xi32> to vector<8x128xi32>
    %10 = arith.cmpi eq, %1, %9 : vector<8x128xi32>
    %11 = arith.extui %10 : vector<8x128xi1> to vector<8x128xi32>
    %12 = arith.sitofp %11 : vector<8x128xi32> to vector<8x128xf32>
    %c8 = arith.constant 8 : index
    %c0_5 = arith.constant 0 : index
    %13 = vector.load %arg3[%c8, %c0_5] : memref<32x1xi32, #tpu.memory_space<vmem>>, vector<8x1xi32>
    %14 = vector.broadcast %13 : vector<8x1xi32> to vector<8x128xi32>
    %15 = arith.cmpi eq, %1, %14 : vector<8x128xi32>
    %16 = arith.extui %15 : vector<8x128xi1> to vector<8x128xi32>
    %17 = arith.sitofp %16 : vector<8x128xi32> to vector<8x128xf32>
    %18 = arith.addf %12, %17 : vector<8x128xf32>
    %c16 = arith.constant 16 : index
    %c0_6 = arith.constant 0 : index
    %19 = vector.load %arg3[%c16, %c0_6] : memref<32x1xi32, #tpu.memory_space<vmem>>, vector<8x1xi32>
    %20 = vector.broadcast %19 : vector<8x1xi32> to vector<8x128xi32>
    %21 = arith.cmpi eq, %1, %20 : vector<8x128xi32>
    %22 = arith.extui %21 : vector<8x128xi1> to vector<8x128xi32>
    %23 = arith.sitofp %22 : vector<8x128xi32> to vector<8x128xf32>
    %24 = arith.addf %18, %23 : vector<8x128xf32>
    %c24 = arith.constant 24 : index
    %c0_7 = arith.constant 0 : index
    %25 = vector.load %arg3[%c24, %c0_7] : memref<32x1xi32, #tpu.memory_space<vmem>>, vector<8x1xi32>
    %26 = vector.broadcast %25 : vector<8x1xi32> to vector<8x128xi32>
    %27 = arith.cmpi eq, %1, %26 : vector<8x128xi32>
    %28 = arith.extui %27 : vector<8x128xi1> to vector<8x128xi32>
    %29 = arith.sitofp %28 : vector<8x128xi32> to vector<8x128xf32>
    %30 = arith.addf %24, %29 : vector<8x128xf32>
    %c16_8 = arith.constant 16 : index
    %c0_9 = arith.constant 0 : index
    %31 = vector.load %arg8[%c16_8, %c0_9] : memref<24x384xf32, #tpu.memory_space<vmem>>, vector<8x128xf32>
    tpu.vector_store %arg8[%c16_8, %c0_9], %30 {strides = array<i32>} : memref<24x384xf32, #tpu.memory_space<vmem>>, vector<8x128xf32>,
    %c0_10 = arith.constant 0 : index
    %c0_11 = arith.constant 0 : index
    %32 = vector.load %arg1[%c0_10, %c0_11] : memref<16x1xi32, #tpu.memory_space<vmem>>, vector<16x1xi32>
    %33 = vector.broadcast %32 : vector<16x1xi32> to vector<16x128xi32>
    %34 = arith.cmpi eq, %0, %33 : vector<16x128xi32>
    %35 = arith.extui %34 : vector<16x128xi1> to vector<16x128xi32>
    %36 = arith.sitofp %35 : vector<16x128xi32> to vector<16x128xf32>
    %c0_12 = arith.constant 0 : index
    %c128 = arith.constant 128 : index
    %37 = vector.load %arg8[%c0_12, %c128] : memref<24x384xf32, #tpu.memory_space<vmem>>, vector<16x128xf32>
    tpu.vector_store %arg8[%c0_12, %c128], %36 {strides = array<i32>} : memref<24x384xf32, #tpu.memory_space<vmem>>, vector<16x128xf32>,
    %c0_13 = arith.constant 0 : index
    %c0_14 = arith.constant 0 : index
    %38 = vector.load %arg4[%c0_13, %c0_14] : memref<32x1xi32, #tpu.memory_space<vmem>>, vector<8x1xi32>
    %39 = vector.broadcast %38 : vector<8x1xi32> to vector<8x128xi32>
    %40 = arith.cmpi eq, %1, %39 : vector<8x128xi32>
    %41 = arith.extui %40 : vector<8x128xi1> to vector<8x128xi32>
    %42 = arith.sitofp %41 : vector<8x128xi32> to vector<8x128xf32>
    %c8_15 = arith.constant 8 : index
    %c0_16 = arith.constant 0 : index
    %43 = vector.load %arg4[%c8_15, %c0_16] : memref<32x1xi32, #tpu.memory_space<vmem>>, vector<8x1xi32>
    %44 = vector.broadcast %43 : vector<8x1xi32> to vector<8x128xi32>
    %45 = arith.cmpi eq, %1, %44 : vector<8x128xi32>
    %46 = arith.extui %45 : vector<8x128xi1> to vector<8x128xi32>
    %47 = arith.sitofp %46 : vector<8x128xi32> to vector<8x128xf32>
    %48 = arith.addf %42, %47 : vector<8x128xf32>
    %c16_17 = arith.constant 16 : index
    %c0_18 = arith.constant 0 : index
    %49 = vector.load %arg4[%c16_17, %c0_18] : memref<32x1xi32, #tpu.memory_space<vmem>>, vector<8x1xi32>
    %50 = vector.broadcast %49 : vector<8x1xi32> to vector<8x128xi32>
    %51 = arith.cmpi eq, %1, %50 : vector<8x128xi32>
    %52 = arith.extui %51 : vector<8x128xi1> to vector<8x128xi32>
    %53 = arith.sitofp %52 : vector<8x128xi32> to vector<8x128xf32>
    %54 = arith.addf %48, %53 : vector<8x128xf32>
    %c24_19 = arith.constant 24 : index
    %c0_20 = arith.constant 0 : index
    %55 = vector.load %arg4[%c24_19, %c0_20] : memref<32x1xi32, #tpu.memory_space<vmem>>, vector<8x1xi32>
    %56 = vector.broadcast %55 : vector<8x1xi32> to vector<8x128xi32>
    %57 = arith.cmpi eq, %1, %56 : vector<8x128xi32>
    %58 = arith.extui %57 : vector<8x128xi1> to vector<8x128xi32>
    %59 = arith.sitofp %58 : vector<8x128xi32> to vector<8x128xf32>
    %60 = arith.addf %54, %59 : vector<8x128xf32>
    %c16_21 = arith.constant 16 : index
    %c128_22 = arith.constant 128 : index
    %61 = vector.load %arg8[%c16_21, %c128_22] : memref<24x384xf32, #tpu.memory_space<vmem>>, vector<8x128xf32>
    tpu.vector_store %arg8[%c16_21, %c128_22], %60 {strides = array<i32>} : memref<24x384xf32, #tpu.memory_space<vmem>>, vector<8x128xf32>,
    %c0_23 = arith.constant 0 : index
    %c0_24 = arith.constant 0 : index
    %62 = vector.load %arg2[%c0_23, %c0_24] : memref<16x1xi32, #tpu.memory_space<vmem>>, vector<16x1xi32>
    %63 = vector.broadcast %62 : vector<16x1xi32> to vector<16x128xi32>
    %64 = arith.cmpi eq, %0, %63 : vector<16x128xi32>
    %65 = arith.extui %64 : vector<16x128xi1> to vector<16x128xi32>
    %66 = arith.sitofp %65 : vector<16x128xi32> to vector<16x128xf32>
    %c0_25 = arith.constant 0 : index
    %c256 = arith.constant 256 : index
    %67 = vector.load %arg8[%c0_25, %c256] : memref<24x384xf32, #tpu.memory_space<vmem>>, vector<16x128xf32>
    tpu.vector_store %arg8[%c0_25, %c256], %66 {strides = array<i32>} : memref<24x384xf32, #tpu.memory_space<vmem>>, vector<16x128xf32>,
    %c0_26 = arith.constant 0 : index
    %c0_27 = arith.constant 0 : index
    %68 = vector.load %arg5[%c0_26, %c0_27] : memref<32x1xi32, #tpu.memory_space<vmem>>, vector<8x1xi32>
    %69 = vector.broadcast %68 : vector<8x1xi32> to vector<8x128xi32>
    %70 = arith.cmpi eq, %1, %69 : vector<8x128xi32>
    %71 = arith.extui %70 : vector<8x128xi1> to vector<8x128xi32>
    %72 = arith.sitofp %71 : vector<8x128xi32> to vector<8x128xf32>
    %c8_28 = arith.constant 8 : index
    %c0_29 = arith.constant 0 : index
    %73 = vector.load %arg5[%c8_28, %c0_29] : memref<32x1xi32, #tpu.memory_space<vmem>>, vector<8x1xi32>
    %74 = vector.broadcast %73 : vector<8x1xi32> to vector<8x128xi32>
    %75 = arith.cmpi eq, %1, %74 : vector<8x128xi32>
    %76 = arith.extui %75 : vector<8x128xi1> to vector<8x128xi32>
    %77 = arith.sitofp %76 : vector<8x128xi32> to vector<8x128xf32>
    %78 = arith.addf %72, %77 : vector<8x128xf32>
    %c16_30 = arith.constant 16 : index
    %c0_31 = arith.constant 0 : index
    %79 = vector.load %arg5[%c16_30, %c0_31] : memref<32x1xi32, #tpu.memory_space<vmem>>, vector<8x1xi32>
    %80 = vector.broadcast %79 : vector<8x1xi32> to vector<8x128xi32>
    %81 = arith.cmpi eq, %1, %80 : vector<8x128xi32>
    %82 = arith.extui %81 : vector<8x128xi1> to vector<8x128xi32>
    %83 = arith.sitofp %82 : vector<8x128xi32> to vector<8x128xf32>
    %84 = arith.addf %78, %83 : vector<8x128xf32>
    %c24_32 = arith.constant 24 : index
    %c0_33 = arith.constant 0 : index
    %85 = vector.load %arg5[%c24_32, %c0_33] : memref<32x1xi32, #tpu.memory_space<vmem>>, vector<8x1xi32>
    %86 = vector.broadcast %85 : vector<8x1xi32> to vector<8x128xi32>
    %87 = arith.cmpi eq, %1, %86 : vector<8x128xi32>
    %88 = arith.extui %87 : vector<8x128xi1> to vector<8x128xi32>
    %89 = arith.sitofp %88 : vector<8x128xi32> to vector<8x128xf32>
    %90 = arith.addf %84, %89 : vector<8x128xf32>
    %c16_34 = arith.constant 16 : index
    %c256_35 = arith.constant 256 : index
    %91 = vector.load %arg8[%c16_34, %c256_35] : memref<24x384xf32, #tpu.memory_space<vmem>>, vector<8x128xf32>
    tpu.vector_store %arg8[%c16_34, %c256_35], %90 {strides = array<i32>} : memref<24x384xf32, #tpu.memory_space<vmem>>, vector<8x128xf32>,
    %c0_36 = arith.constant 0 : index
    %c0_37 = arith.constant 0 : index
    %92 = vector.load %arg8[%c0_36, %c0_37] : memref<24x384xf32, #tpu.memory_space<vmem>>, vector<24x384xf32>
    %c0_38 = arith.constant 0 : index
    %c0_39 = arith.constant 0 : index
    %93 = vector.load %arg6[%c0_38, %c0_39] : memref<384x192xf32, #tpu.memory_space<vmem>>, vector<384x192xf32>
    %cst = arith.constant dense<0.000000e+00> : vector<24x192xf32>
    %94 = tpu.matmul %92, %93, %cst {dimension_numbers = #tpu.dot_dimension_numbers<[1], [0], [0], [1], [0, 0, 1, 1], [], []>} : vector<24x384xf32>, vector<384x192xf32>, vector<24x192xf32> -> vector<24x192xf32>
    %95 = tpu.iota {dimensions = array<i32: 0>} : vector<8x1xi32>
    %c8_i32 = arith.constant 8 : i32
    %96 = vector.broadcast %c8_i32 : i32 to vector<8x1xi32>
    %97 = arith.cmpi slt, %95, %96 : vector<8x1xi32>
    %98 = arith.extui %97 : vector<8x1xi1> to vector<8x1xi32>
    %99 = arith.sitofp %98 : vector<8x1xi32> to vector<8x1xf32>
    %100 = vector.extract_strided_slice %94 {offsets = [0, 0], sizes = [8, 32], strides = [1, 1]} : vector<24x192xf32> to vector<8x32xf32>
    %101 = vector.extract_strided_slice %94 {offsets = [8, 0], sizes = [8, 32], strides = [1, 1]} : vector<24x192xf32> to vector<8x32xf32>
    %102 = vector.extract_strided_slice %94 {offsets = [16, 32], sizes = [8, 32], strides = [1, 1]} : vector<24x192xf32> to vector<8x32xf32>
    %cst_40 = arith.constant 2.500000e-01 : f32
    %103 = vector.broadcast %cst_40 : f32 to vector<8x32xf32>
    %104 = arith.mulf %102, %103 : vector<8x32xf32>
    %105 = arith.mulf %100, %104 : vector<8x32xf32>
    %cst_41 = arith.constant dense<0.000000e+00> : vector<8xf32>
    %106 = vector.multi_reduction <add>, %105, %cst_41 [1] : vector<8x32xf32> to vector<8xf32>
    %107 = vector.shape_cast %106 : vector<8xf32> to vector<8x1xf32>
    %cst_42 = arith.constant 1.000000e-15 : f32
    %108 = vector.broadcast %cst_42 : f32 to vector<8x1xf32>
    %109 = arith.addf %107, %108 : vector<8x1xf32>
    %110 = arith.mulf %101, %104 : vector<8x32xf32>
    %cst_43 = arith.constant dense<0.000000e+00> : vector<8xf32>
    %111 = vector.multi_reduction <add>, %110, %cst_43 [1] : vector<8x32xf32> to vector<8xf32>
    %112 = vector.shape_cast %111 : vector<8xf32> to vector<8x1xf32>
    %cst_44 = arith.constant 1.000000e-15 : f32
    %113 = vector.broadcast %cst_44 : f32 to vector<8x1xf32>
    %114 = arith.addf %112, %113 : vector<8x1xf32>
    %cst_45 = arith.constant 0.000000e+00 : f32
    %115 = vector.broadcast %cst_45 : f32 to vector<8x1xf32>
    %116 = arith.minimumf %109, %115 : vector<8x1xf32>
    %117 = math.absf %109 : vector<8x1xf32>
    %cst_46 = arith.constant 0.000000e+00 : f32
    %118 = vector.broadcast %cst_46 : f32 to vector<8x1xf32>
    %119 = arith.subf %118, %117 : vector<8x1xf32>
    %120 = math.exp %119 : vector<8x1xf32>
    %121 = math.log1p %120 : vector<8x1xf32>
    %122 = arith.subf %116, %121 : vector<8x1xf32>
    %cst_47 = arith.constant 0.000000e+00 : f32
    %123 = vector.broadcast %cst_47 : f32 to vector<8x1xf32>
    %124 = arith.subf %123, %122 : vector<8x1xf32>
    %cst_48 = arith.constant 1.000000e+00 : f32
    %125 = vector.broadcast %cst_48 : f32 to vector<8x1xf32>
    %126 = arith.subf %125, %114 : vector<8x1xf32>
    %cst_49 = arith.constant 0.000000e+00 : f32
    %127 = vector.broadcast %cst_49 : f32 to vector<8x1xf32>
    %128 = arith.minimumf %126, %127 : vector<8x1xf32>
    %129 = math.absf %126 : vector<8x1xf32>
    %cst_50 = arith.constant 0.000000e+00 : f32
    %130 = vector.broadcast %cst_50 : f32 to vector<8x1xf32>
    %131 = arith.subf %130, %129 : vector<8x1xf32>
    %132 = math.exp %131 : vector<8x1xf32>
    %133 = math.log1p %132 : vector<8x1xf32>
    %134 = arith.subf %128, %133 : vector<8x1xf32>
    %cst_51 = arith.constant 0.000000e+00 : f32
    %135 = vector.broadcast %cst_51 : f32 to vector<8x1xf32>
    %136 = arith.subf %135, %134 : vector<8x1xf32>
    %137 = arith.addf %124, %136 : vector<8x1xf32>
    %138 = arith.mulf %137, %99 : vector<8x1xf32>
    %139 = vector.shape_cast %138 : vector<8x1xf32> to vector<1x8x1xf32>
    %cst_52 = arith.constant dense<0.000000e+00> : vector<1xf32>
    %140 = vector.multi_reduction <add>, %139, %cst_52 [1, 2] : vector<1x8x1xf32> to vector<1xf32>
    %141 = vector.shape_cast %140 : vector<1xf32> to vector<1x1x1xf32>
    %142 = vector.extract %141[0, 0, 0] : f32 from vector<1x1x1xf32>
    %cst_53 = arith.constant 1.250000e-01 : f32
    %143 = arith.mulf %142, %cst_53 : f32
    %cst_54 = arith.constant 0.000000e+00 : f32
    %144 = arith.addf %cst_54, %143 : f32
    %145 = vector.extract_strided_slice %94 {offsets = [0, 64], sizes = [8, 32], strides = [1, 1]} : vector<24x192xf32> to vector<8x32xf32>
    %146 = vector.extract_strided_slice %94 {offsets = [8, 64], sizes = [8, 32], strides = [1, 1]} : vector<24x192xf32> to vector<8x32xf32>
    %147 = vector.extract_strided_slice %94 {offsets = [16, 96], sizes = [8, 32], strides = [1, 1]} : vector<24x192xf32> to vector<8x32xf32>
    %cst_55 = arith.constant 2.500000e-01 : f32
    %148 = vector.broadcast %cst_55 : f32 to vector<8x32xf32>
    %149 = arith.mulf %147, %148 : vector<8x32xf32>
    %150 = arith.mulf %145, %149 : vector<8x32xf32>
    %cst_56 = arith.constant dense<0.000000e+00> : vector<8xf32>
    %151 = vector.multi_reduction <add>, %150, %cst_56 [1] : vector<8x32xf32> to vector<8xf32>
    %152 = vector.shape_cast %151 : vector<8xf32> to vector<8x1xf32>
    %cst_57 = arith.constant 1.000000e-15 : f32
    %153 = vector.broadcast %cst_57 : f32 to vector<8x1xf32>
    %154 = arith.addf %152, %153 : vector<8x1xf32>
    %155 = arith.mulf %146, %149 : vector<8x32xf32>
    %cst_58 = arith.constant dense<0.000000e+00> : vector<8xf32>
    %156 = vector.multi_reduction <add>, %155, %cst_58 [1] : vector<8x32xf32> to vector<8xf32>
    %157 = vector.shape_cast %156 : vector<8xf32> to vector<8x1xf32>
    %cst_59 = arith.constant 1.000000e-15 : f32
    %158 = vector.broadcast %cst_59 : f32 to vector<8x1xf32>
    %159 = arith.addf %157, %158 : vector<8x1xf32>
    %cst_60 = arith.constant 0.000000e+00 : f32
    %160 = vector.broadcast %cst_60 : f32 to vector<8x1xf32>
    %161 = arith.minimumf %154, %160 : vector<8x1xf32>
    %162 = math.absf %154 : vector<8x1xf32>
    %cst_61 = arith.constant 0.000000e+00 : f32
    %163 = vector.broadcast %cst_61 : f32 to vector<8x1xf32>
    %164 = arith.subf %163, %162 : vector<8x1xf32>
    %165 = math.exp %164 : vector<8x1xf32>
    %166 = math.log1p %165 : vector<8x1xf32>
    %167 = arith.subf %161, %166 : vector<8x1xf32>
    %cst_62 = arith.constant 0.000000e+00 : f32
    %168 = vector.broadcast %cst_62 : f32 to vector<8x1xf32>
    %169 = arith.subf %168, %167 : vector<8x1xf32>
    %cst_63 = arith.constant 1.000000e+00 : f32
    %170 = vector.broadcast %cst_63 : f32 to vector<8x1xf32>
    %171 = arith.subf %170, %159 : vector<8x1xf32>
    %cst_64 = arith.constant 0.000000e+00 : f32
    %172 = vector.broadcast %cst_64 : f32 to vector<8x1xf32>
    %173 = arith.minimumf %171, %172 : vector<8x1xf32>
    %174 = math.absf %171 : vector<8x1xf32>
    %cst_65 = arith.constant 0.000000e+00 : f32
    %175 = vector.broadcast %cst_65 : f32 to vector<8x1xf32>
    %176 = arith.subf %175, %174 : vector<8x1xf32>
    %177 = math.exp %176 : vector<8x1xf32>
    %178 = math.log1p %177 : vector<8x1xf32>
    %179 = arith.subf %173, %178 : vector<8x1xf32>
    %cst_66 = arith.constant 0.000000e+00 : f32
    %180 = vector.broadcast %cst_66 : f32 to vector<8x1xf32>
    %181 = arith.subf %180, %179 : vector<8x1xf32>
    %182 = arith.addf %169, %181 : vector<8x1xf32>
    %183 = arith.mulf %182, %99 : vector<8x1xf32>
    %184 = vector.shape_cast %183 : vector<8x1xf32> to vector<1x8x1xf32>
    %cst_67 = arith.constant dense<0.000000e+00> : vector<1xf32>
    %185 = vector.multi_reduction <add>, %184, %cst_67 [1, 2] : vector<1x8x1xf32> to vector<1xf32>
    %186 = vector.shape_cast %185 : vector<1xf32> to vector<1x1x1xf32>
    %187 = vector.extract %186[0, 0, 0] : f32 from vector<1x1x1xf32>
    %cst_68 = arith.constant 1.250000e-01 : f32
    %188 = arith.mulf %187, %cst_68 : f32
    %189 = arith.addf %144, %188 : f32
    %190 = vector.extract_strided_slice %94 {offsets = [0, 128], sizes = [8, 32], strides = [1, 1]} : vector<24x192xf32> to vector<8x32xf32>
    %191 = vector.extract_strided_slice %94 {offsets = [8, 128], sizes = [8, 32], strides = [1, 1]} : vector<24x192xf32> to vector<8x32xf32>
    %192 = vector.extract_strided_slice %94 {offsets = [16, 160], sizes = [8, 32], strides = [1, 1]} : vector<24x192xf32> to vector<8x32xf32>
    %cst_69 = arith.constant 2.500000e-01 : f32
    %193 = vector.broadcast %cst_69 : f32 to vector<8x32xf32>
    %194 = arith.mulf %192, %193 : vector<8x32xf32>
    %195 = arith.mulf %190, %194 : vector<8x32xf32>
    %cst_70 = arith.constant dense<0.000000e+00> : vector<8xf32>
    %196 = vector.multi_reduction <add>, %195, %cst_70 [1] : vector<8x32xf32> to vector<8xf32>
    %197 = vector.shape_cast %196 : vector<8xf32> to vector<8x1xf32>
    %cst_71 = arith.constant 1.000000e-15 : f32
    %198 = vector.broadcast %cst_71 : f32 to vector<8x1xf32>
    %199 = arith.addf %197, %198 : vector<8x1xf32>
    %200 = arith.mulf %191, %194 : vector<8x32xf32>
    %cst_72 = arith.constant dense<0.000000e+00> : vector<8xf32>
    %201 = vector.multi_reduction <add>, %200, %cst_72 [1] : vector<8x32xf32> to vector<8xf32>
    %202 = vector.shape_cast %201 : vector<8xf32> to vector<8x1xf32>
    %cst_73 = arith.constant 1.000000e-15 : f32
    %203 = vector.broadcast %cst_73 : f32 to vector<8x1xf32>
    %204 = arith.addf %202, %203 : vector<8x1xf32>
    %cst_74 = arith.constant 0.000000e+00 : f32
    %205 = vector.broadcast %cst_74 : f32 to vector<8x1xf32>
    %206 = arith.minimumf %199, %205 : vector<8x1xf32>
    %207 = math.absf %199 : vector<8x1xf32>
    %cst_75 = arith.constant 0.000000e+00 : f32
    %208 = vector.broadcast %cst_75 : f32 to vector<8x1xf32>
    %209 = arith.subf %208, %207 : vector<8x1xf32>
    %210 = math.exp %209 : vector<8x1xf32>
    %211 = math.log1p %210 : vector<8x1xf32>
    %212 = arith.subf %206, %211 : vector<8x1xf32>
    %cst_76 = arith.constant 0.000000e+00 : f32
    %213 = vector.broadcast %cst_76 : f32 to vector<8x1xf32>
    %214 = arith.subf %213, %212 : vector<8x1xf32>
    %cst_77 = arith.constant 1.000000e+00 : f32
    %215 = vector.broadcast %cst_77 : f32 to vector<8x1xf32>
    %216 = arith.subf %215, %204 : vector<8x1xf32>
    %cst_78 = arith.constant 0.000000e+00 : f32
    %217 = vector.broadcast %cst_78 : f32 to vector<8x1xf32>
    %218 = arith.minimumf %216, %217 : vector<8x1xf32>
    %219 = math.absf %216 : vector<8x1xf32>
    %cst_79 = arith.constant 0.000000e+00 : f32
    %220 = vector.broadcast %cst_79 : f32 to vector<8x1xf32>
    %221 = arith.subf %220, %219 : vector<8x1xf32>
    %222 = math.exp %221 : vector<8x1xf32>
    %223 = math.log1p %222 : vector<8x1xf32>
    %224 = arith.subf %218, %223 : vector<8x1xf32>
    %cst_80 = arith.constant 0.000000e+00 : f32
    %225 = vector.broadcast %cst_80 : f32 to vector<8x1xf32>
    %226 = arith.subf %225, %224 : vector<8x1xf32>
    %227 = arith.addf %214, %226 : vector<8x1xf32>
    %228 = arith.mulf %227, %99 : vector<8x1xf32>
    %229 = vector.shape_cast %228 : vector<8x1xf32> to vector<1x8x1xf32>
    %cst_81 = arith.constant dense<0.000000e+00> : vector<1xf32>
    %230 = vector.multi_reduction <add>, %229, %cst_81 [1, 2] : vector<1x8x1xf32> to vector<1xf32>
    %231 = vector.shape_cast %230 : vector<1xf32> to vector<1x1x1xf32>
    %232 = vector.extract %231[0, 0, 0] : f32 from vector<1x1x1xf32>
    %cst_82 = arith.constant 1.250000e-01 : f32
    %233 = arith.mulf %232, %cst_82 : f32
    %234 = arith.addf %189, %233 : f32
    %c0_83 = arith.constant 0 : index
    %c0_84 = arith.constant 0 : index
    %235 = memref.load %arg7[%c0_83, %c0_84] : memref<1x1xf32, #tpu.memory_space<smem>>
    memref.store %234, %arg7[%c0_83, %c0_84] : memref<1x1xf32, #tpu.memory_space<smem>>
    return
  }
}

</mosaic_0001>

<bundles_post_ra>
// kernel: cbow_triple_loss.1
= control target key start
LH: loop header
LB: loop body
LE: loop exit
PB: predicated region body
PF: predicated region fallthrough
CT: control target
= control target key end

     0   :  { %v725_v2 = vmov 0   ;;  %v726_v5 = vmov 0.0   ;;  %s1168_s0 = inlined_call_operand.vmem [shape: s32[16,1], index: 0, kind: input, shape index: {}]   ;;  %s1169_s1 = inlined_call_operand.vmem [shape: s32[16,1], index: 1, kind: input, shape index: {}]   ;;  %s1170_s2 = inlined_call_operand.vmem [shape: s32[16,1], index: 2, kind: input, shape index: {}]   ;;  %s1171_s3 = inlined_call_operand.vmem [shape: s32[32,1], index: 3, kind: input, shape index: {}]   ;;  %s1172_s4 = inlined_call_operand.vmem [shape: s32[32,1], index: 4, kind: input, shape index: {}]   ;;  %s1173_s5 = inlined_call_operand.vmem [shape: s32[32,1], index: 5, kind: input, shape index: {}]   ;;  %s1174_s6 = inlined_call_operand.vmem [shape: f32[384,192], index: 6, kind: input, shape index: {}]   ;;  %s1175_s7 = inlined_call_operand.hbm [shape: f32[1,1], index: 7, kind: output, shape index: {}]  }
   0x1   :  { %v93_v0 = vld [vmem:[%s1172_s4] sm:$0xff]  ;;  %690 = vset.pattern.permute.xlu1 %v725_v2  ;;  %689 = vset.pattern.permute.xlu0 %v725_v2  ;;  %v100_v3 = vld [vmem:[%s1172_s4 + $0x8] sm:$0xff]  ;;  %v213_v6 = vld [vmem:[%s1174_s6 + $0xf8] sm:$0xff] }
   0x2   :  { %v77_v1 = vld [vmem:[%s1169_s1] sm:$0xff]  ;;  %95 = vperm.xlu1 %690, %v93_v0   ;;  %425 = vmatprep.mubr.f32.mxu1 %v726_v5  ;;  %v212_v7 = vld [vmem:[%s1174_s6 + $0xf0] sm:$0xff]  ;;  %v211_v8 = vld [vmem:[%s1174_s6 + $0xe8] sm:$0xff] }
   0x3   :  { %80 = vperm.xlu0 %689, %v77_v1   ;;  %v29_v4 = vld [vmem:[%s1168_s0] sm:$0xff]  ;;  %278 = vmatprep.subr.mxu0 %v213_v6  ;;  %v209_v12 = vld [vmem:[%s1174_s6 + $0xd8] sm:$0xff]  ;;  %v208_v13 = vld [vmem:[%s1174_s6 + $0xd0] sm:$0xff] }
   0x4   :  { %v45_v9 = vld [vmem:[%s1171_s3] sm:$0xff]  ;;  %279 = vmatpush1.msra.mxu0 %v212_v7  ;;  %v52_v15 = vld [vmem:[%s1171_s3 + $0x8] sm:$0xff]  ;;  %v205_v18 = vld [vmem:[%s1174_s6 + $0xb8] sm:$0xff] }
   0x5   :  { %v125_v10 = vld [vmem:[%s1170_s2] sm:$0xff]  ;;  %280 = vmatprep.subr.mxu0 %v211_v8  ;;  %v207_v16 = vld [vmem:[%s1174_s6 + $0xc8] sm:$0xff]  ;;  %v108_v19 = vld [vmem:[%s1172_s4 + $0x10] sm:$0xff] }
   0x6   :  { %102 = vperm.xlu1 %690, %v100_v3   ;;  %v210_v11 = vld [vmem:[%s1174_s6 + $0xe0] sm:$0xff]  ;;  %v148_v20 = vld [vmem:[%s1173_s5 + $0x8] sm:$0xff]  ;;  %v204_v21 = vld [vmem:[%s1174_s6 + $0xb0] sm:$0xff] }
   0x7   :  { %32 = vperm.xlu0 %689, %v29_v4   ;;  %v141_v14 = vld [vmem:[%s1173_s5] sm:$0xff]  ;;  %281 = vmatpush1.msra.mxu0 %v210_v11  ;;  %v203_v22 = vld [vmem:[%s1174_s6 + $0xa8] sm:$0xff]  ;;  %v277_v25 = vld [vmem:[%s1174_s6 + $0x2f8] sm:$0xff] }
   0x8   :  { %282 = vmatprep.subr.mxu0 %v209_v12  ;;  %v206_v17 = vld [vmem:[%s1174_s6 + $0xc0] sm:$0xff]  ;;  %v78_v23 = vld [vmem:[%s1169_s1 + $0x8] sm:$0xff]  ;;  %v60_v26 = vld [vmem:[%s1171_s3 + $0x10] sm:$0xff]  ;;  %361 = vmatprep.subr.mxu1 %v277_v25 }
   0x9   :  { %283 = vmatpush1.msra.mxu0 %v208_v13  ;;  %v202_v24 = vld [vmem:[%s1174_s6 + $0xa0] sm:$0xff]  ;;  %v276_v27 = vld [vmem:[%s1174_s6 + $0x2f0] sm:$0xff]  ;;  %v275_v28 = vld [vmem:[%s1174_s6 + $0x2e8] sm:$0xff] }
   0xa   :  { %47 = vperm.xlu1 %690, %v45_v9   ;;  %284 = vmatprep.subr.mxu0 %v207_v16  ;;  %v201_v29 = vld [vmem:[%s1174_s6 + $0x98] sm:$0xff]  ;;  %v274_v30 = vld [vmem:[%s1174_s6 + $0x2e0] sm:$0xff]  ;;  %v200_v31 = vld [vmem:[%s1174_s6 + $0x90] sm:$0xff] }
   0xb   :  { %128 = vperm.xlu0 %689, %v125_v10   ;;  %285 = vmatpush1.msra.mxu0 %v206_v17  ;;  %v273_v32 = vld [vmem:[%s1174_s6 + $0x2d8] sm:$0xff]  ;;  %v199_v33 = vld [vmem:[%s1174_s6 + $0x88] sm:$0xff]  ;;  %v272_v34 = vld [vmem:[%s1174_s6 + $0x2d0] sm:$0xff] }
   0xc   :  { %286 = vmatprep.subr.mxu0 %v205_v18  ;;  %362 = vmatpush1.msra.mxu1 %v276_v27  ;;  %v30_v35 = vld [vmem:[%s1168_s0 + $0x8] sm:$0xff]  ;;  %v156_v36 = vld [vmem:[%s1173_s5 + $0x10] sm:$0xff]  ;;  %v198_v37 = vld [vmem:[%s1174_s6 + $0x80] sm:$0xff] }
   0xd   :  { %287 = vmatpush1.msra.mxu0 %v204_v21  ;;  %363 = vmatprep.subr.mxu1 %v275_v28  ;;  %v271_v38 = vld [vmem:[%s1174_s6 + $0x2c8] sm:$0xff]  ;;  %v197_v39 = vld [vmem:[%s1174_s6 + $0x78] sm:$0xff]  ;;  %v270_v40 = vld [vmem:[%s1174_s6 + $0x2c0] sm:$0xff] }
   0xe   :  { %143 = vperm.xlu1 %690, %v141_v14   ;;  %288 = vmatprep.subr.mxu0 %v203_v22  ;;  %v196_v41 = vld [vmem:[%s1174_s6 + $0x70] sm:$0xff]  ;;  %v269_v42 = vld [vmem:[%s1174_s6 + $0x2b8] sm:$0xff]  ;;  %v126_v43 = vld [vmem:[%s1170_s2 + $0x8] sm:$0xff] }
   0xf   :  { %54 = vperm.xlu0 %689, %v52_v15   ;;  %289 = vmatpush1.msra.mxu0 %v202_v24  ;;  %v116_v44 = vld [vmem:[%s1172_s4 + $0x18] sm:$0xff]  ;;  %v195_v45 = vld [vmem:[%s1174_s6 + $0x68] sm:$0xff]  ;;  %v268_v46 = vld [vmem:[%s1174_s6 + $0x2b0] sm:$0xff] }
  0x10   :  { %290 = vmatprep.subr.mxu0 %v201_v29  ;;  %364 = vmatpush1.msra.mxu1 %v274_v30  ;;  %v194_v47 = vld [vmem:[%s1174_s6 + $0x60] sm:$0xff]  ;;  %v267_v48 = vld [vmem:[%s1174_s6 + $0x2a8] sm:$0xff]  ;;  %v193_v49 = vld [vmem:[%s1174_s6 + $0x58] sm:$0xff] }
  0x11   :  { %291 = vmatpush1.msra.mxu0 %v200_v31  ;;  %365 = vmatprep.subr.mxu1 %v273_v32  ;;  %v266_v50 = vld [vmem:[%s1174_s6 + $0x2a0] sm:$0xff]  ;;  %v164_v51 = vld [vmem:[%s1173_s5 + $0x18] sm:$0xff]  ;;  %v192_v53 = vld [vmem:[%s1174_s6 + $0x50] sm:$0xff] }
  0x12   :  { %110 = vperm.xlu1 %690, %v108_v19   ;;  %292 = vmatprep.subr.mxu0 %v199_v33  ;;  %v68_v52 = vld [vmem:[%s1171_s3 + $0x18] sm:$0xff]  ;;  %v191_v55 = vld [vmem:[%s1174_s6 + $0x48] sm:$0xff]  ;;  %v264_v56 = vld [vmem:[%s1174_s6 + $0x290] sm:$0xff] }
  0x13   :  { %150 = vperm.xlu0 %689, %v148_v20   ;;  %366 = vmatpush1.msra.mxu1 %v272_v34  ;;  %v265_v54 = vld [vmem:[%s1174_s6 + $0x298] sm:$0xff]  ;;  %v190_v57 = vld [vmem:[%s1174_s6 + $0x40] sm:$0xff]  ;;  %v263_v58 = vld [vmem:[%s1174_s6 + $0x288] sm:$0xff] }
  0x14   :  { %293 = vmatpush1.msra.mxu0 %v198_v37  ;;  %367 = vmatprep.subr.mxu1 %v271_v38  ;;  %v189_v59 = vld [vmem:[%s1174_s6 + $0x38] sm:$0xff]  ;;  %v262_v60 = vld [vmem:[%s1174_s6 + $0x280] sm:$0xff]  ;;  %v188_v61 = vld [vmem:[%s1174_s6 + $0x30] sm:$0xff] }
  0x15   :  { %294 = vmatprep.subr.mxu0 %v197_v39  ;;  %368 = vmatpush1.msra.mxu1 %v270_v40  ;;  %v261_v62 = vld [vmem:[%s1174_s6 + $0x278] sm:$0xff]  ;;  %v187_v63 = vld [vmem:[%s1174_s6 + $0x28] sm:$0xff]  ;;  %v260_v0 = vld [vmem:[%s1174_s6 + $0x270] sm:$0xff] }
  0x16   :  { %83 = vperm.xlu1 %690, %v78_v23   ;;  %295 = vmatpush1.msra.mxu0 %v196_v41  ;;  %v186_v1 = vld [vmem:[%s1174_s6 + $0x20] sm:$0xff]  ;;  %v259_v2 = vld [vmem:[%s1174_s6 + $0x268] sm:$0xff] }
  0x17   :  { %62 = vperm.xlu0 %689, %v60_v26   ;;  %369 = vmatprep.subr.mxu1 %v269_v42 }
  0x18   :  { %296 = vmatprep.subr.mxu0 %v195_v45  ;;  %370 = vmatpush1.msra.mxu1 %v268_v46 }
  0x19   :  { %297 = vmatpush1.msra.mxu0 %v194_v47  ;;  %371 = vmatprep.subr.mxu1 %v267_v48 }
  0x1a   :  { %35 = vperm.xlu1 %690, %v30_v35   ;;  %298 = vmatprep.subr.mxu0 %v193_v49 }
  0x1b   :  { %158 = vperm.xlu0 %689, %v156_v36   ;;  %372 = vmatpush1.msra.mxu1 %v266_v50 }
  0x1c   :  { %299 = vmatpush1.msra.mxu0 %v192_v53  ;;  %373 = vmatprep.subr.mxu1 %v265_v54 }
  0x1d   :  { %300 = vmatprep.subr.mxu0 %v191_v55  ;;  %374 = vmatpush1.msra.mxu1 %v264_v56 }
  0x1e   :  { %131 = vperm.xlu1 %690, %v126_v43   ;;  %301 = vmatpush1.msra.mxu0 %v190_v57 }
  0x1f   :  { %118 = vperm.xlu0 %689, %v116_v44   ;;  %375 = vmatprep.subr.mxu1 %v263_v58 }
  0x20   :  { %302 = vmatprep.subr.mxu0 %v189_v59  ;;  %376 = vmatpush1.msra.mxu1 %v262_v60 }
  0x22   :  { %166 = vperm.xlu1 %690, %v164_v51  }
  0x23   :  { %70 = vperm.xlu0 %689, %v68_v52  }
  0x24   :  { %12 = vsyncpa [#allocation4], 0  ;;  %303 = vmatpush1.msra.mxu0 %v188_v61  ;;  %v185_v3 = vld [vmem:[%s1174_s6 + $0x18] sm:$0xff]  ;;  %377 = vmatprep.subr.mxu1 %v261_v62  ;;  %v258_v4 = vld [vmem:[%s1174_s6 + $0x260] sm:$0xff]  ;;  %v27_v53 = vlaneseq  ;;  %v727_v57 = vmov 1.0   ;;  %s729_s12 = smov 64  }
  0x25   :  { %304 = vmatprep.subr.mxu0 %v187_v63  ;;  %v184_v6 = vld [vmem:[%s1174_s6 + $0x10] sm:$0xff]  ;;  %378 = vmatpush1.msra.mxu1 %v260_v0  ;;  %v257_v7 = vld [vmem:[%s1174_s6 + $0x258] sm:$0xff]  ;;  %v183_v8 = vld [vmem:[%s1174_s6 + $0x8] sm:$0xff]  ;;  %s730_s2 = smov [#allocation3]  }
  0x26   :  { %305 = vmatpush1.msra.mxu0 %v186_v1  ;;  %379 = vmatprep.subr.mxu1 %v259_v2  ;;  %v256_v9 = vld [vmem:[%s1174_s6 + $0x250] sm:$0xff]  ;;  %v182_v10 = vld [vmem:[%s1174_s6] sm:$0xff]  ;;  %v255_v11 = vld [vmem:[%s1174_s6 + $0x248] sm:$0xff]  ;;  %v1114_v54 = vand.u32 127, %v27_v53 }
  0x27   :  { %306 = vmatprep.subr.mxu0 %v185_v3  ;;  %380 = vmatpush1.msra.mxu1 %v258_v4  ;;  %v245_v12 = vld [vmem:[%s1174_s6 + $0x1f8] sm:$0xff]  ;;  %v254_v13 = vld [vmem:[%s1174_s6 + $0x240] sm:$0xff]  ;;  %v244_v14 = vld [vmem:[%s1174_s6 + $0x1f0] sm:$0xff] }
  0x28   :  { %307 = vmatpush1.msra.mxu0 %v184_v6  ;;  %381 = vmatprep.subr.mxu1 %v257_v7  ;;  %v253_v15 = vld [vmem:[%s1174_s6 + $0x238] sm:$0xff]  ;;  %v243_v16 = vld [vmem:[%s1174_s6 + $0x1e8] sm:$0xff]  ;;  %v252_v17 = vld [vmem:[%s1174_s6 + $0x230] sm:$0xff] }
  0x29   :  { %308 = vmatprep.subr.mxu0 %v183_v8  ;;  %382 = vmatpush1.msra.mxu1 %v256_v9  ;;  %v242_v18 = vld [vmem:[%s1174_s6 + $0x1e0] sm:$0xff]  ;;  %v251_v19 = vld [vmem:[%s1174_s6 + $0x228] sm:$0xff]  ;;  %v241_v20 = vld [vmem:[%s1174_s6 + $0x1d8] sm:$0xff] }
  0x2a   :  { %309 = vmatpush1.msra.mxu0 %v182_v10  ;;  %383 = vmatprep.subr.mxu1 %v255_v11  ;;  %v250_v21 = vld [vmem:[%s1174_s6 + $0x220] sm:$0xff]  ;;  %v240_v22 = vld [vmem:[%s1174_s6 + $0x1d0] sm:$0xff]  ;;  %v249_v23 = vld [vmem:[%s1174_s6 + $0x218] sm:$0xff] }
  0x2b   :  { %310 = vmatprep.subr.mxu0 %v245_v12  ;;  %384 = vmatpush1.msra.mxu1 %v254_v13  ;;  %v239_v24 = vld [vmem:[%s1174_s6 + $0x1c8] sm:$0xff]  ;;  %v248_v25 = vld [vmem:[%s1174_s6 + $0x210] sm:$0xff]  ;;  %v238_v26 = vld [vmem:[%s1174_s6 + $0x1c0] sm:$0xff] }
  0x2c   :  { %311 = vmatpush2.msra.mxu0 %v244_v14  ;;  %385 = vmatprep.subr.mxu1 %v253_v15  ;;  %v247_v27 = vld [vmem:[%s1174_s6 + $0x208] sm:$0xff]  ;;  %v237_v28 = vld [vmem:[%s1174_s6 + $0x1b8] sm:$0xff]  ;;  %v246_v29 = vld [vmem:[%s1174_s6 + $0x200] sm:$0xff] }
  0x2d   :  { %312 = vmatprep.subr.mxu0 %v243_v16  ;;  %386 = vmatpush1.msra.mxu1 %v252_v17  ;;  %v236_v30 = vld [vmem:[%s1174_s6 + $0x1b0] sm:$0xff]  ;;  %v235_v31 = vld [vmem:[%s1174_s6 + $0x1a8] sm:$0xff]  ;;  %v234_v32 = vld [vmem:[%s1174_s6 + $0x1a0] sm:$0xff] }
  0x2e   :  { %313 = vmatpush2.msra.mxu0 %v242_v18  ;;  %387 = vmatprep.subr.mxu1 %v251_v19  ;;  %v233_v33 = vld [vmem:[%s1174_s6 + $0x198] sm:$0xff]  ;;  %v232_v34 = vld [vmem:[%s1174_s6 + $0x190] sm:$0xff]  ;;  %v231_v35 = vld [vmem:[%s1174_s6 + $0x188] sm:$0xff] }
  0x2f   :  { %314 = vmatprep.subr.mxu0 %v241_v20  ;;  %388 = vmatpush1.msra.mxu1 %v250_v21  ;;  %v230_v36 = vld [vmem:[%s1174_s6 + $0x180] sm:$0xff]  ;;  %v229_v37 = vld [vmem:[%s1174_s6 + $0x178] sm:$0xff]  ;;  %v228_v38 = vld [vmem:[%s1174_s6 + $0x170] sm:$0xff] }
  0x30   :  { %315 = vmatpush2.msra.mxu0 %v240_v22  ;;  %389 = vmatprep.subr.mxu1 %v249_v23  ;;  %v227_v39 = vld [vmem:[%s1174_s6 + $0x168] sm:$0xff]  ;;  %v226_v40 = vld [vmem:[%s1174_s6 + $0x160] sm:$0xff]  ;;  %v225_v41 = vld [vmem:[%s1174_s6 + $0x158] sm:$0xff] }
  0x31   :  { %316 = vmatprep.subr.mxu0 %v239_v24  ;;  %390 = vmatpush1.msra.mxu1 %v248_v25  ;;  %v224_v42 = vld [vmem:[%s1174_s6 + $0x150] sm:$0xff]  ;;  %v223_v43 = vld [vmem:[%s1174_s6 + $0x148] sm:$0xff]  ;;  %v222_v44 = vld [vmem:[%s1174_s6 + $0x140] sm:$0xff] }
  0x32   :  { %317 = vmatpush2.msra.mxu0 %v238_v26  ;;  %391 = vmatprep.subr.mxu1 %v247_v27  ;;  %v221_v45 = vld [vmem:[%s1174_s6 + $0x138] sm:$0xff]  ;;  %v220_v46 = vld [vmem:[%s1174_s6 + $0x130] sm:$0xff]  ;;  %v219_v47 = vld [vmem:[%s1174_s6 + $0x128] sm:$0xff] }
  0x33   :  { %318 = vmatprep.subr.mxu0 %v237_v28  ;;  %392 = vmatpush1.msra.mxu1 %v246_v29  ;;  %v218_v48 = vld [vmem:[%s1174_s6 + $0x120] sm:$0xff]  ;;  %v217_v49 = vld [vmem:[%s1174_s6 + $0x118] sm:$0xff]  ;;  %v216_v50 = vld [vmem:[%s1174_s6 + $0x110] sm:$0xff] }
  0x34   :  { %319 = vmatpush2.msra.mxu0 %v236_v30  ;;  %v215_v51 = vld [vmem:[%s1174_s6 + $0x108] sm:$0xff]  ;;  %v214_v52 = vld [vmem:[%s1174_s6 + $0x100] sm:$0xff]  ;;  %s728_s6 = smov 96  }
  0x35   :  { %320 = vmatprep.subr.mxu0 %v235_v31 }
  0x36   :  { %321 = vmatpush2.msra.mxu0 %v234_v32 }
  0x37   :  { %322 = vmatprep.subr.mxu0 %v233_v33 }
  0x38   :  { %323 = vmatpush2.msra.mxu0 %v232_v34 }
  0x39   :  { %324 = vmatprep.subr.mxu0 %v231_v35 }
  0x3a   :  { %325 = vmatpush2.msra.mxu0 %v230_v36 }
  0x3b   :  { %326 = vmatprep.subr.mxu0 %v229_v37 }
  0x3c   :  { %327 = vmatpush2.msra.mxu0 %v228_v38 }
  0x3d   :  { %328 = vmatprep.subr.mxu0 %v227_v39 }
  0x3e   :  { %329 = vmatpush2.msra.mxu0 %v226_v40 }
  0x3f   :  { %330 = vmatprep.subr.mxu0 %v225_v41 }
  0x40   :  { %331 = vmatpush2.msra.mxu0 %v224_v42 }
  0x41   :  { %332 = vmatprep.subr.mxu0 %v223_v43 }
  0x42   :  { %333 = vmatpush2.msra.mxu0 %v222_v44 }
  0x43   :  { %334 = vmatprep.subr.mxu0 %v221_v45 }
  0x44   :  { %335 = vmatpush2.msra.mxu0 %v220_v46 }
  0x45   :  { %336 = vmatprep.subr.mxu0 %v219_v47 }
  0x46   :  { %337 = vmatpush2.msra.mxu0 %v218_v48 }
  0x47   :  { %338 = vmatprep.subr.mxu0 %v217_v49 }
  0x48   :  { %339 = vmatpush2.msra.mxu0 %v216_v50 }
  0x49   :  { %340 = vmatprep.subr.mxu0 %v215_v51 }
  0x4a   :  { %341 = vmatpush2.msra.mxu0 %v214_v52 }
  0x7d   :  { %v96_v55 = vpop.permute.xlu1 %95 }
  0x7e   :  { %v81_v56 = vpop.permute.xlu0 %80  ;;  %vm97_vm5 = vcmp.eq.s32.totalorder %v1114_v54, %v96_v55 }
  0x7f   :  { %vm85_vm0 = vcmp.eq.s32.totalorder %v1114_v54, %v81_v56  ;;  %v661_v8 = vsel %vm97_vm5, 1.0, %v726_v5  ;;  %vm500_vm5 = vcmask 7168  }
  0x80   :  { %671 = vmatprep.mubr.msk.f32.mxu0 %vm85_vm0, %v727_v57 }
  0x81   :  { %v103_v58 = vpop.permute.xlu1 %102 }
  0x82   :  { %v33_v59 = vpop.permute.xlu0 %32  ;;  %vm104_vm3 = vcmp.eq.s32.totalorder %v1114_v54, %v103_v58 }
  0x83   :  { %vm37_vm1 = vcmp.eq.s32.totalorder %v1114_v54, %v33_v59  ;;  %v662_v4 = vsel %vm104_vm3, 1.0, %v726_v5 }
  0x84   :  { %672 = vmatmul.mubr.msk.f32.vlgmr.msra.gmra.mxu0 %vm37_vm1, %v727_v57  ;;  %v107_v10 = vadd.f32 %v662_v4, %v661_v8 }
  0x85   :  { %v48_v60 = vpop.permute.xlu1 %47 }
  0x86   :  { %v129_v61 = vpop.permute.xlu0 %128  ;;  %vm49_vm10 = vcmp.eq.s32.totalorder %v1114_v54, %v48_v60 }
  0x87   :  { %vm133_vm2 = vcmp.eq.s32.totalorder %v1114_v54, %v129_v61  ;;  %v655_v15 = vsel %vm49_vm10, 1.0, %v726_v5 }
  0x88   :  { %675 = vmatmul.mubr.msk.f32.vlgmr.msra.gmra.mxu1 %vm133_vm2, %v727_v57  ;;  %vm455_vm2 = vcmask 261120  }
  0x89   :  { %431 = vmatprep.mubr.f32.mxu1 %v726_v5  ;;  %v144_v62 = vpop.permute.xlu1 %143 }
  0x8a   :  { %v55_v63 = vpop.permute.xlu0 %54  ;;  %vm145_vm11 = vcmp.eq.s32.totalorder %v1114_v54, %v144_v62 }
  0x8b   :  { %vm56_vm7 = vcmp.eq.s32.totalorder %v1114_v54, %v55_v63  ;;  %v667_v17 = vsel %vm145_vm11, 1.0, %v726_v5 }
  0x8c   :  { %v656_v11 = vsel %vm56_vm7, 1.0, %v726_v5 }
  0x8d   :  { %v111_v0 = vpop.permute.xlu1 %110  ;;  %v59_v21 = vadd.f32 %v656_v11, %v655_v15 }
  0x8e   :  { %v151_v1 = vpop.permute.xlu0 %150  ;;  %vm112_vm6 = vcmp.eq.s32.totalorder %v1114_v54, %v111_v0 }
  0x8f   :  { %vm152_vm8 = vcmp.eq.s32.totalorder %v1114_v54, %v151_v1  ;;  %v663_v9 = vsel %vm112_vm6, 1.0, %v726_v5 }
  0x90   :  { %v668_v12 = vsel %vm152_vm8, 1.0, %v726_v5  ;;  %v115_v16 = vadd.f32 %v663_v9, %v107_v10 }
  0x91   :  { %v84_v2 = vpop.permute.xlu1 %83  ;;  %v155_v22 = vadd.f32 %v668_v12, %v667_v17 }
  0x92   :  { %v63_v3 = vpop.permute.xlu0 %62  ;;  %vm86_vm4 = vcmp.eq.s32.totalorder %v1114_v54, %v84_v2 }
  0x93   :  { %673 = vmatprep.mubr.msk.f32.mxu0 %vm86_vm4, %v727_v57  ;;  %vm64_vm12 = vcmp.eq.s32.totalorder %v1114_v54, %v63_v3 }
  0x94   :  { %v657_v18 = vsel %vm64_vm12, 1.0, %v726_v5 }
  0x95   :  { %v36_v6 = vpop.permute.xlu1 %35  ;;  %v67_v26 = vadd.f32 %v657_v18, %v59_v21 }
  0x96   :  { %v159_v7 = vpop.permute.xlu0 %158  ;;  %vm38_vm9 = vcmp.eq.s32.totalorder %v1114_v54, %v36_v6 }
  0x97   :  { %674 = vmatmul.mubr.msk.f32.gmra.mxu0 %vm38_vm9, %v727_v57  ;;  %vm160_vm13 = vcmp.eq.s32.totalorder %v1114_v54, %v159_v7 }
  0x98   :  { %v669_v19 = vsel %vm160_vm13, 1.0, %v726_v5 }
  0x99   :  { %v132_v13 = vpop.permute.xlu1 %131  ;;  %v163_v27 = vadd.f32 %v669_v19, %v155_v22 }
  0x9a   :  { %v119_v14 = vpop.permute.xlu0 %118  ;;  %vm134_vm14 = vcmp.eq.s32.totalorder %v1114_v54, %v132_v13 }
  0x9b   :  { %vm120_vm15 = vcmp.eq.s32.totalorder %v1114_v54, %v119_v14  ;;  %676 = vmatmul.mubr.msk.f32.gmra.mxu1 %vm134_vm14, %v727_v57 }
  0x9c   :  { %v664_v20 = vsel %vm120_vm15, 1.0, %v726_v5  ;;  %437 = vmatprep.mubr.f32.mxu1 %v726_v5 }
  0x9d   :  { %v123_v23 = vadd.f32 %v664_v20, %v115_v16  ;;  %v167_v24 = vpop.permute.xlu1 %166 }
  0x9e   :  { %v71_v25 = vpop.permute.xlu0 %70  ;;  %vm168_vm0 = vcmp.eq.s32.totalorder %v1114_v54, %v167_v24 }
  0x9f   :  { %vm72_vm1 = vcmp.eq.s32.totalorder %v1114_v54, %v71_v25  ;;  %354 = vmatprep.mubr.f32.mxu0 %v123_v23  ;;  %v670_v28 = vsel %vm168_vm0, 1.0, %v726_v5 }
  0xa0   :  { %v658_v29 = vsel %vm72_vm1, 1.0, %v726_v5  ;;  %v171_v30 = vadd.f32 %v670_v28, %v163_v27 }
  0xa1   :  { %v75_v31 = vadd.f32 %v658_v29, %v67_v26 }
  0xa2   :  { %438 = vmatmul.mubr.f32.gmra.mxu1 %v171_v30 }
  0xa3   :  { %355 = vmatmul.mubr.f32.gmra.mxu0 %v75_v31 }
 0x144   :  { %v344_v32 = vpop.f32.mrf.mxu0 }
 0x146   :  { %v346_v35 = vpop.f32.mrf.mxu0 }
 0x148   :  { %v427_v33 = vpop.f32.mrf.mxu1 }
 0x149   :  { %v428_v34 = vadd.f32 %v427_v33, %v344_v32 }
 0x14a   :  { %v429_v36 = vpop.f32.mrf.mxu1 }
 0x14b   :  { %v430_v37 = vadd.f32 %v429_v36, %v346_v35 }
 0x157   :  { %v350_v38 = vpop.f32.mrf.mxu0 }
 0x159   :  { %v352_v41 = vpop.f32.mrf.mxu0 }
 0x15b   :  { %v433_v39 = vpop.f32.mrf.mxu1 }
 0x15c   :  { %v434_v40 = vadd.f32 %v433_v39, %v350_v38 }
 0x15d   :  { %v435_v42 = vpop.f32.mrf.mxu1 }
 0x15e   :  { %v436_v43 = vadd.f32 %v435_v42, %v352_v41 }
 0x162   :  { %v439_v45 = vpop.f32.mrf.mxu1 }
 0x163   :  { %v356_v44 = vpop.f32.mrf.mxu0 }
 0x164   :  { %v440_v46 = vadd.f32 %v439_v45, %v356_v44  ;;  %v441_v47 = vpop.f32.mrf.mxu1 }
 0x165   :  { %v358_v5 = vpop.f32.mrf.mxu0 }
 0x166   :  { %v449_v48 = vmul.f32 0.25, %v440_v46  ;;  %v442_v49 = vadd.f32 %v441_v47, %v358_v5 }
 0x168   :  { %451 = vrot.lane.b32.xlu0 %v449_v48, %s728_s6  ;;  %v576_v50 = vmul.f32 0.25, %v442_v49 }
 0x16c   :  { %578 = vrot.lane.b32.xlu0 %v576_v50, %s728_s6 }
 0x1da   :  { %v452_v51 = vpop.permute.xlu0 %451 }
 0x1db   :  { %v460_v52 = vmul.f32 %v452_v51, %v434_v40  ;;  %v454_v53 = vmul.f32 %v452_v51, %v428_v34 }
 0x1dd   :  { %522 = vrot.lane.b32.xlu1 %v460_v52, %s729_s12  ;;  %v461_v54 = vsel %vm455_vm2, %v460_v52, 0.0  ;;  %v456_v55 = vsel %vm455_vm2, %v454_v53, 0.0 }
 0x1de   :  { %462 = vadd.xlane.f32.xlu0 %v461_v54  ;;  %v579_v56 = vpop.permute.xlu0 %578 }
 0x1df   :  { %v586_v58 = vmul.f32 %v579_v56, %v436_v43  ;;  %v581_v61 = vmul.f32 %v579_v56, %v430_v37 }
 0x1e1   :  { %514 = vrot.lane.b32.xlu1 %v454_v53, %s729_s12  ;;  %v587_v63 = vsel %vm455_vm2, %v586_v58, 0.0  ;;  %v582_v0 = vsel %vm455_vm2, %v581_v61, 0.0 }
 0x1e2   :  { %457 = vadd.xlane.f32.xlu0 %v456_v55 }
 0x24f   :  { %v523_v57 = vpop.permute.xlu1 %522 }
 0x250   :  { %v525_v59 = vsel %vm455_vm2, %v523_v57, 0.0 }
 0x251   :  { %526 = vadd.xlane.f32.xlu1 %v525_v59 }
 0x253   :  { %v515_v60 = vpop.permute.xlu1 %514 }
 0x254   :  { %v517_v62 = vsel %vm455_vm2, %v515_v60, 0.0 }
 0x255   :  { %518 = vadd.xlane.f32.xlu0 %v517_v62  ;;  %588 = vadd.xlane.f32.xlu1 %v587_v63 }
 0x259   :  { %583 = vadd.xlane.f32.xlu0 %v582_v0 }
 0x267   :  { %v463_v1 = vpop.xlane.xlu0 %462 }
 0x268   :  { %v464_v2 = vadd.f32 1e-15, %v463_v1 }
 0x26a   :  { %v481_v3 = vsub.f32 1.0, %v464_v2 }
 0x26b   :  { %v458_v4 = vpop.xlane.xlu0 %457 }
 0x26c   :  { %v483_v6 = vand.u32 2147483647, %v481_v3  ;;  %v459_v7 = vadd.f32 1e-15, %v458_v4  ;;  %v482_v27 = vmin.f32 %v481_v3, 0.0 }
 0x26e   :  { %v484_v8 = vsub.f32 0.0, %v483_v6  ;;  %v466_v9 = vand.u32 2147483647, %v459_v7  ;;  %v465_v31 = vmin.f32 %v459_v7, 0.0 }
 0x270   :  { %v485_v10 = vmul.f32 1.442695, %v484_v8  ;;  %v467_v11 = vsub.f32 0.0, %v466_v9 }
 0x272   :  { %691 = vpow2.f32 %v485_v10  ;;  %v468_v12 = vmul.f32 1.442695, %v467_v11 }
 0x274   :  { %693 = vpow2.f32 %v468_v12 }
 0x27f   :  { %v692_v13 = vpop.eup %691 }
 0x280   :  { %v487_v14 = vadd.f32 1.0, %v692_v13  ;;  %v490_v17 = vmul.f32 -0.5, %v692_v13  ;;  %v493_v20 = vand.u32 2147483647, %v692_v13 }
 0x281   :  { %v694_v15 = vpop.eup %693 }
 0x282   :  { %v470_v16 = vadd.f32 1.0, %v694_v15  ;;  %695 = vlog2.f32 %v487_v14  ;;  %v473_v18 = vmul.f32 -0.5, %v694_v15  ;;  %v491_v19 = vadd.f32 1.0, %v490_v17 }
 0x283   :  { %v476_v23 = vand.u32 2147483647, %v694_v15  ;;  %vm494_vm3 = vcmp.lt.f32.partialorder %v493_v20, 0.0004427343 }
 0x284   :  { %697 = vlog2.f32 %v470_v16  ;;  %v474_v21 = vadd.f32 1.0, %v473_v18  ;;  %v492_v25 = vmul.f32 %v692_v13, %v491_v19 }
 0x285   :  { %vm477_vm4 = vcmp.lt.f32.partialorder %v476_v23, 0.0004427343 }
 0x286   :  { %v475_v29 = vmul.f32 %v694_v15, %v474_v21 }
 0x28f   :  { %v696_v22 = vpop.eup %695 }
 0x290   :  { %v489_v24 = vmul.f32 0.6931472, %v696_v22 }
 0x291   :  { %v698_v26 = vpop.eup %697 }
 0x292   :  { %v472_v28 = vmul.f32 0.6931472, %v698_v26  ;;  %v495_v30 = vsel %vm494_vm3, %v492_v25, %v489_v24 }
 0x293   :  { %v496_v32 = vsub.f32 %v482_v27, %v495_v30 }
 0x294   :  { %v478_v33 = vsel %vm477_vm4, %v475_v29, %v472_v28 }
 0x295   :  { %v479_v34 = vsub.f32 %v465_v31, %v478_v33  ;;  %v497_v36 = vsub.f32 0.0, %v496_v32 }
 0x297   :  { %v480_v35 = vsub.f32 0.0, %v479_v34 }
 0x299   :  { %v498_v37 = vadd.f32 %v497_v36, %v480_v35 }
 0x29b   :  { %v501_v38 = vsel %vm500_vm5, %v498_v37, 0.0 }
 0x29c   :  { %502 = vadd.xlane.f32.xlu1 %v501_v38 }
 0x2da   :  { %v527_v39 = vpop.xlane.xlu1 %526 }
 0x2db   :  { %v528_v40 = vadd.f32 1e-15, %v527_v39 }
 0x2dd   :  { %v545_v41 = vsub.f32 1.0, %v528_v40 }
 0x2de   :  { %v589_v42 = vpop.xlane.xlu1 %588  ;;  %v519_v43 = vpop.xlane.xlu0 %518 }
 0x2df   :  { %v547_v44 = vand.u32 2147483647, %v545_v41  ;;  %v590_v45 = vadd.f32 1e-15, %v589_v42  ;;  %v1155_v46 = vadd.f32 1e-15, %v519_v43 }
 0x2e0   :  { %v546_v19 = vmin.f32 %v545_v41, 0.0 }
 0x2e1   :  { %v548_v5 = vsub.f32 0.0, %v547_v44  ;;  %v607_v47 = vsub.f32 1.0, %v590_v45  ;;  %v530_v48 = vand.u32 2147483647, %v1155_v46  ;;  %v529_v20 = vmin.f32 %v1155_v46, 0.0 }
 0x2e2   :  { %v584_v49 = vpop.xlane.xlu0 %583 }
 0x2e3   :  { %v549_v50 = vmul.f32 1.442695, %v548_v5  ;;  %v609_v51 = vand.u32 2147483647, %v607_v47  ;;  %v531_v52 = vsub.f32 0.0, %v530_v48  ;;  %v608_v32 = vmin.f32 %v607_v47, 0.0 }
 0x2e4   :  { %v1158_v53 = vadd.f32 1e-15, %v584_v49 }
 0x2e5   :  { %699 = vpow2.f32 %v549_v50  ;;  %v610_v54 = vsub.f32 0.0, %v609_v51  ;;  %v532_v55 = vmul.f32 1.442695, %v531_v52 }
 0x2e6   :  { %v592_v56 = vand.u32 2147483647, %v1158_v53  ;;  %v591_v35 = vmin.f32 %v1158_v53, 0.0 }
 0x2e7   :  { %v611_v57 = vmul.f32 1.442695, %v610_v54  ;;  %701 = vpow2.f32 %v532_v55 }
 0x2e8   :  { %v593_v58 = vsub.f32 0.0, %v592_v56 }
 0x2e9   :  { %703 = vpow2.f32 %v611_v57 }
 0x2ea   :  { %v594_v59 = vmul.f32 1.442695, %v593_v58 }
 0x2ec   :  { %705 = vpow2.f32 %v594_v59 }
 0x2f2   :  { %v700_v60 = vpop.eup %699 }
 0x2f3   :  { %v551_v61 = vadd.f32 1.0, %v700_v60  ;;  %v554_v4 = vmul.f32 -0.5, %v700_v60  ;;  %v557_v9 = vand.u32 2147483647, %v700_v60 }
 0x2f4   :  { %v702_v62 = vpop.eup %701 }
 0x2f5   :  { %707 = vlog2.f32 %v551_v61  ;;  %v534_v0 = vadd.f32 1.0, %v702_v62  ;;  %v537_v6 = vmul.f32 -0.5, %v702_v62  ;;  %v555_v7 = vadd.f32 1.0, %v554_v4 }
 0x2f6   :  { %v704_v63 = vpop.eup %703  ;;  %v540_v12 = vand.u32 2147483647, %v702_v62  ;;  %vm558_vm6 = vcmp.lt.f32.partialorder %v557_v9, 0.0004427343 }
 0x2f7   :  { %v613_v1 = vadd.f32 1.0, %v704_v63  ;;  %709 = vlog2.f32 %v534_v0  ;;  %v616_v8 = vmul.f32 -0.5, %v704_v63  ;;  %v538_v11 = vadd.f32 1.0, %v537_v6 }
 0x2f8   :  { %v556_v15 = vmul.f32 %v700_v60, %v555_v7  ;;  %v619_v17 = vand.u32 2147483647, %v704_v63  ;;  %vm541_vm7 = vcmp.lt.f32.partialorder %v540_v12, 0.0004427343 }
 0x2f9   :  { %v706_v2 = vpop.eup %705  ;;  %711 = vlog2.f32 %v613_v1  ;;  %v617_v16 = vadd.f32 1.0, %v616_v8  ;;  %v539_v24 = vmul.f32 %v702_v62, %v538_v11 }
 0x2fa   :  { %v596_v3 = vadd.f32 1.0, %v706_v2  ;;  %v599_v13 = vmul.f32 -0.5, %v706_v2  ;;  %v602_v26 = vand.u32 2147483647, %v706_v2  ;;  %vm620_vm8 = vcmp.lt.f32.partialorder %v619_v17, 0.0004427343 }
 0x2fb   :  { %v618_v29 = vmul.f32 %v704_v63, %v617_v16 }
 0x2fc   :  { %713 = vlog2.f32 %v596_v3  ;;  %v600_v25 = vadd.f32 1.0, %v599_v13  ;;  %vm603_vm9 = vcmp.lt.f32.partialorder %v602_v26, 0.0004427343 }
 0x2fe   :  { %v601_v37 = vmul.f32 %v706_v2, %v600_v25 }
 0x302   :  { %v708_v10 = vpop.eup %707 }
 0x303   :  { %v553_v14 = vmul.f32 0.6931472, %v708_v10 }
 0x304   :  { %v710_v18 = vpop.eup %709 }
 0x305   :  { %v559_v21 = vsel %vm558_vm6, %v556_v15, %v553_v14  ;;  %v536_v23 = vmul.f32 0.6931472, %v710_v18 }
 0x306   :  { %v712_v22 = vpop.eup %711  ;;  %v560_v27 = vsub.f32 %v546_v19, %v559_v21 }
 0x307   :  { %v615_v28 = vmul.f32 0.6931472, %v712_v22  ;;  %v542_v30 = vsel %vm541_vm7, %v539_v24, %v536_v23 }
 0x308   :  { %v543_v33 = vsub.f32 %v529_v20, %v542_v30  ;;  %v561_v39 = vsub.f32 0.0, %v560_v27 }
 0x309   :  { %v714_v31 = vpop.eup %713  ;;  %v621_v34 = vsel %vm620_vm8, %v618_v29, %v615_v28 }
 0x30a   :  { %v598_v36 = vmul.f32 0.6931472, %v714_v31  ;;  %v544_v38 = vsub.f32 0.0, %v543_v33  ;;  %v622_v40 = vsub.f32 %v608_v32, %v621_v34 }
 0x30c   :  { %v604_v41 = vsel %vm603_vm9, %v601_v37, %v598_v36  ;;  %v562_v43 = vadd.f32 %v561_v39, %v544_v38  ;;  %v623_v46 = vsub.f32 0.0, %v622_v40 }
 0x30d   :  { %v605_v42 = vsub.f32 %v591_v35, %v604_v41 }
 0x30e   :  { %v564_v44 = vsel %vm500_vm5, %v562_v43, 0.0 }
 0x30f   :  { %v606_v45 = vsub.f32 0.0, %v605_v42  ;;  %565 = vadd.xlane.f32.xlu0 %v564_v44 }
 0x311   :  { %v624_v5 = vadd.f32 %v623_v46, %v606_v45 }
 0x313   :  { %v626_v47 = vsel %vm500_vm5, %v624_v5, 0.0 }
 0x314   :  { %627 = vadd.xlane.f32.xlu1 %v626_v47 }
 0x325   :  { %v503_v48 = vpop.xlane.xlu1 %502 }
 0x326   :  { %v504_v49 = vrot.slane %v503_v48, 4 }
 0x328   :  { %v505_v50 = vadd.f32 %v504_v49, %v503_v48 }
 0x32a   :  { %v506_v51 = vrot.slane %v505_v50, 2 }
 0x32c   :  { %v507_v52 = vadd.f32 %v506_v51, %v505_v50 }
 0x32e   :  { %v508_v53 = vrot.slane %v507_v52, 1 }
 0x330   :  { %v509_v54 = vadd.f32 %v508_v53, %v507_v52 }
 0x332   :  { %677 = vpush %v509_v54 }
 0x363   :  { %s678_s13 = spop %677 }
 0x364   :  { %s511_s16 = smul.f32 0.125, %s678_s13 }
 0x398   :  { %v566_v55 = vpop.xlane.xlu0 %565 }
 0x399   :  { %v567_v56 = vrot.slane %v566_v55, 4 }
 0x39b   :  { %v568_v57 = vadd.f32 %v567_v56, %v566_v55 }
 0x39d   :  { %v628_v58 = vpop.xlane.xlu1 %627  ;;  %v569_v59 = vrot.slane %v568_v57, 2 }
 0x39e   :  { %v629_v60 = vrot.slane %v628_v58, 4 }
 0x39f   :  { %v570_v61 = vadd.f32 %v569_v59, %v568_v57 }
 0x3a0   :  { %v630_v62 = vadd.f32 %v629_v60, %v628_v58 }
 0x3a1   :  { %v571_v0 = vrot.slane %v570_v61, 1 }
 0x3a2   :  { %v631_v63 = vrot.slane %v630_v62, 2 }
 0x3a3   :  { %v572_v2 = vadd.f32 %v571_v0, %v570_v61 }
 0x3a4   :  { %v632_v1 = vadd.f32 %v631_v63, %v630_v62 }
 0x3a5   :  { %679 = vpush %v572_v2 }
 0x3a6   :  { %v633_v3 = vrot.slane %v632_v1, 1 }
 0x3a8   :  { %v634_v4 = vadd.f32 %v633_v3, %v632_v1 }
 0x3aa   :  { %681 = vpush %v634_v4 }
 0x3d6   :  { %s680_s14 = spop %679 }
 0x3d7   :  { %s574_s15 = smul.f32 0.125, %s680_s14 }
 0x3d9   :  { %s575_s18 = sadd.f32 %s574_s15, %s511_s16 }
 0x3db   :  { %s682_s17 = spop %681 }
 0x3dc   :  { %s636_s19 = smul.f32 0.125, %s682_s17 }
 0x3de   :  { %s637_s20 = sadd.f32 %s636_s19, %s575_s18 }
 0x3e0   :  { %639 = sst [smem:[#allocation3]] %s637_s20 }
 0x3e1   :  { %647 = dma.smem_to_hbm %s730_s2, 16, %s1175_s7, [#allocation4]  }
 0x3e2   :  { %723 = dma.done.wait [#allocation4], 16  }
 0x3e3   :  { %724 = vsyncadd [#allocation4], 4294967280 }
 0x3e4   :  { %651 = sfence }
 0x3e5   :  { %652 = vsyncpa [#allocation4], 1 }

</bundles_post_ra>
